<compile_context>
chip_gen: v7x
topology: tpu7x:2x2x1
jax: 0.10.0
libtpu: 0.0.40
codegen_flags: <defaults>
</compile_context>

<pallas_src>
import jax
import jax.numpy as jnp
from jax.experimental import pallas as pl
from jax.experimental.pallas import tpu as pltpu


# ----------------------------------------------------------------------------
# Fused forward kernel (everything fits in VMEM at these sizes -> one block)
# ----------------------------------------------------------------------------
def gcn_forward_kernel(u_emb_ref, i_sel_ref, x_ref, adj_ref,
                       w1_ref, b1_ref, w2_ref, b2_ref,
                       w_u_ref, w_i_ref, b_fc_ref, out_ref):
    adj = adj_ref[...]                                   # [N, N]  adj[dst, src], self loops in

    # symmetric GCN normalization: deg = in-degree (incl. self loop), dis = D^{-1/2}
    deg = jnp.sum(adj, axis=-1, keepdims=True)           # [N, 1]  (XLU lane reduce)
    dis = jnp.where(deg > 0.0, jax.lax.rsqrt(deg), 0.0)  # [N, 1]  (EUP rsqrt)

    def gcn_layer(h, w, b):
        hw = jnp.dot(h, w, preferred_element_type=jnp.float32)        # [N, C]   MXU
        # D^{-1/2} (A (D^{-1/2} (H W)))  -- avoids transposing dis to [1, N]
        agg = jnp.dot(adj, dis * hw, preferred_element_type=jnp.float32)  # [N, C] MXU
        return dis * agg + b

    h1 = gcn_layer(x_ref[...], w1_ref[...], b1_ref[...])   # [N, hidden_2]  (stays in VMEM/vregs)
    h2 = gcn_layer(h1, w2_ref[...], b2_ref[...])           # [N, dim]

    # i_embedding = i @ node_embeddings   (selection matrix, as in torch.matmul(i, i_embedding))
    i_emb = jnp.dot(i_sel_ref[...], h2, preferred_element_type=jnp.float32)   # [B, dim]

    # fc1(cat(u_emb, i_emb)) as a lane reduction (no lane-width-1 MXU matmuls)
    logits = (jnp.sum(u_emb_ref[...] * w_u_ref[...], axis=-1, keepdims=True)
              + jnp.sum(i_emb * w_i_ref[...], axis=-1, keepdims=True)
              + b_fc_ref[...])                                                 # [B, 1]
    out_ref[...] = 1.0 / (1.0 + jnp.exp(-logits))                              # sigmoid


# ----------------------------------------------------------------------------
# Wrapper: single-block grid, full arrays resident in VMEM
# ----------------------------------------------------------------------------
def _full_spec(shape):
    return pl.BlockSpec(shape, lambda i: (0,) * len(shape))


def gcn_model_forward(params, u, i_sel, adj, *, dim):
    # Embedding lookups are glue:
    #  - user gather is tiny (B rows), done in plain JAX
    #  - graph.x == arange(N) -> item gather is an identity, pass the table directly
    u_emb = params["user_emb"][u]                     # [B, dim]
    x = params["item_emb"]                            # [N, hidden_1]

    b1 = params["bias1"].reshape(1, -1)               # [1, hidden_2]
    b2 = params["bias2"].reshape(1, -1)               # [1, dim]
    w_u = params["w_fc"][:, :dim]                     # [1, dim]   (u_emb half of fc1 weight)
    w_i = params["w_fc"][:, dim:]                     # [1, dim]   (i_emb half of fc1 weight)
    b_fc = params["b_fc"].reshape(1, 1)               # [1, 1]

    batch = u_emb.shape[0]
    args = (u_emb, i_sel, x, adj,
            params["w1"], b1, params["w2"], b2,
            w_u, w_i, b_fc)

    # TODO(synk): for large graphs, tile adj over dst rows (grid axis marked "parallel",
    #             bf16 adj / activations, explicit vmem_limit_bytes) -- not needed at N=16.
    return pl.pallas_call(
        gcn_forward_kernel,
        out_shape=jax.ShapeDtypeStruct((batch, 1), jnp.float32),
        grid=(1,),
        in_specs=[_full_spec(a.shape) for a in args],
        out_specs=_full_spec((batch, 1)),
        compiler_params=pltpu.CompilerParams(dimension_semantics=("arbitrary",)),
    )(*args)


# ----------------------------------------------------------------------------
# Main
# ----------------------------------------------------------------------------
if __name__ == "__main__":
    # model sizes
    dim, hidden_1, hidden_2 = 8, 32, 16
    u_nodes, i_nodes = 8, 16          # i_nodes == number of graph nodes N
    B = 2
    N = i_nodes

    key = jax.random.PRNGKey(0)
    ks = jax.random.split(key, 16)

    def init(k, shape, scale=0.1):
        return (scale * jax.random.normal(k, shape)).astype(jnp.float32)

    params = {
        "user_emb": init(ks[0], (u_nodes, dim)),
        "item_emb": init(ks[1], (i_nodes, hidden_1)),
        # conv1: GCNConv(hidden_1 -> hidden_2)
        "w1":    init(ks[2], (hidden_1, hidden_2)),
        "bias1": init(ks[3], (hidden_2,)),
        # conv2: GCNConv(hidden_2 -> dim)
        "w2":    init(ks[4], (hidden_2, dim)),
        "bias2": init(ks[5], (dim,)),
        # fc1: Linear(2*dim, 1)
        "w_fc":  init(ks[6], (1, 2 * dim)),
        "b_fc":  init(ks[7], (1,)),
    }

    # inputs
    u = jax.random.randint(ks[8], (B,), 0, u_nodes)                  # user ids
    graph_x = jnp.arange(N, dtype=jnp.int32)                         # node ids (identity)
    # i : selection/aggregation matrix [B, N]  (torch.matmul(i, i_embedding))
    item_ids = jax.random.randint(ks[9], (B,), 0, N)
    i_sel = jax.nn.one_hot(item_ids, N, dtype=jnp.float32)

    # random edge_index [2, E] -> dense adjacency adj[dst, src] with self loops
    E = 48
    src = jax.random.randint(ks[10], (E,), 0, N)
    dst = jax.random.randint(ks[11], (E,), 0, N)
    adj = jnp.zeros((N, N), jnp.float32).at[dst, src].set(1.0)
    adj = adj.at[jnp.arange(N), jnp.arange(N)].set(1.0)              # add_self_loops

    out = gcn_model_forward(params, u, i_sel, adj, dim=dim)
    out = jax.block_until_ready(out)

    # pure-JAX reference check of the fused kernel
    deg = jnp.sum(adj, axis=-1, keepdims=True)
    dis = 1.0 / jnp.sqrt(deg)
    h = params["item_emb"]
    h = dis * (adj @ (dis * (h @ params["w1"]))) + params["bias1"]
    h = dis * (adj @ (dis * (h @ params["w2"]))) + params["bias2"]
    i_emb_ref = i_sel @ h
    u_emb_ref = params["user_emb"][u]
    logits_ref = jnp.concatenate([u_emb_ref, i_emb_ref], axis=1) @ params["w_fc"].T + params["b_fc"]
    ref = jax.nn.sigmoid(logits_ref)

    assert out.shape == (B, 1)
    assert bool(jnp.all(jnp.isfinite(out)))
    assert bool(jnp.all((out > 0.0) & (out < 1.0)))
    assert bool(jnp.allclose(out, ref, atol=1e-5, rtol=1e-5))
    print("KERNEL_OK")
</pallas_src>

<mosaic_0001>
module attributes {stable_mosaic.version = 11 : i64} {
  func.func @gcn_forward_kernel(%arg0: i32, %arg1: memref<2x8xf32, #tpu.memory_space<vmem>>, %arg2: memref<2x16xf32, #tpu.memory_space<vmem>>, %arg3: memref<16x32xf32, #tpu.memory_space<vmem>>, %arg4: memref<16x16xf32, #tpu.memory_space<vmem>>, %arg5: memref<32x16xf32, #tpu.memory_space<vmem>>, %arg6: memref<1x16xf32, #tpu.memory_space<vmem>>, %arg7: memref<16x8xf32, #tpu.memory_space<vmem>>, %arg8: memref<1x8xf32, #tpu.memory_space<vmem>>, %arg9: memref<1x8xf32, #tpu.memory_space<vmem>>, %arg10: memref<1x8xf32, #tpu.memory_space<vmem>>, %arg11: memref<1x1xf32, #tpu.memory_space<vmem>>, %arg12: memref<2x1xf32, #tpu.memory_space<vmem>>) attributes {dimension_semantics = [#tpu.dimension_semantics<arbitrary>], iteration_bounds = array<i64: 1>, scalar_prefetch = 0 : i64, scratch_operands = 0 : i64, tpu.core_type = #tpu.core_type<tc>, window_params = [{pipeline_mode = #tpu.pipeline_mode<synchronous>, transform_indices = @transform_0, window_bounds = array<i64: 2, 8>}, {pipeline_mode = #tpu.pipeline_mode<synchronous>, transform_indices = @transform_1, window_bounds = array<i64: 2, 16>}, {pipeline_mode = #tpu.pipeline_mode<synchronous>, transform_indices = @transform_2, window_bounds = array<i64: 16, 32>}, {pipeline_mode = #tpu.pipeline_mode<synchronous>, transform_indices = @transform_3, window_bounds = array<i64: 16, 16>}, {pipeline_mode = #tpu.pipeline_mode<synchronous>, transform_indices = @transform_4, window_bounds = array<i64: 32, 16>}, {pipeline_mode = #tpu.pipeline_mode<synchronous>, transform_indices = @transform_5, window_bounds = array<i64: 1, 16>}, {pipeline_mode = #tpu.pipeline_mode<synchronous>, transform_indices = @transform_6, window_bounds = array<i64: 16, 8>}, {pipeline_mode = #tpu.pipeline_mode<synchronous>, transform_indices = @transform_7, window_bounds = array<i64: 1, 8>}, {pipeline_mode = #tpu.pipeline_mode<synchronous>, transform_indices = @transform_8, window_bounds = array<i64: 1, 8>}, {pipeline_mode = #tpu.pipeline_mode<synchronous>, transform_indices = @transform_9, window_bounds = array<i64: 1, 8>}, {pipeline_mode = #tpu.pipeline_mode<synchronous>, transform_indices = @transform_10, window_bounds = array<i64: 1, 1>}, {pipeline_mode = #tpu.pipeline_mode<synchronous>, transform_indices = @transform_11, window_bounds = array<i64: 2, 1>}]} {
    %c0 = arith.constant 0 : index
    %c0_0 = arith.constant 0 : index
    %0 = vector.load %arg4[%c0, %c0_0] : memref<16x16xf32, #tpu.memory_space<vmem>>, vector<16x16xf32>
    %cst = arith.constant dense<0.000000e+00> : vector<16xf32>
    %1 = vector.multi_reduction <add>, %0, %cst [1] : vector<16x16xf32> to vector<16xf32>
    %2 = vector.shape_cast %1 : vector<16xf32> to vector<16x1xf32>
    %cst_1 = arith.constant 0.000000e+00 : f32
    %3 = vector.broadcast %cst_1 : f32 to vector<16x1xf32>
    %4 = arith.cmpf ogt, %2, %3 : vector<16x1xf32>
    %5 = math.rsqrt %2 : vector<16x1xf32>
    %cst_2 = arith.constant 0.000000e+00 : f32
    %6 = vector.broadcast %cst_2 : f32 to vector<16x1xf32>
    %7 = arith.select %4, %5, %6 : vector<16x1xi1>, vector<16x1xf32>
    %c0_3 = arith.constant 0 : index
    %c0_4 = arith.constant 0 : index
    %8 = vector.load %arg3[%c0_3, %c0_4] : memref<16x32xf32, #tpu.memory_space<vmem>>, vector<16x32xf32>
    %c0_5 = arith.constant 0 : index
    %c0_6 = arith.constant 0 : index
    %9 = vector.load %arg5[%c0_5, %c0_6] : memref<32x16xf32, #tpu.memory_space<vmem>>, vector<32x16xf32>
    %c0_7 = arith.constant 0 : index
    %c0_8 = arith.constant 0 : index
    %10 = vector.load %arg6[%c0_7, %c0_8] : memref<1x16xf32, #tpu.memory_space<vmem>>, vector<1x16xf32>
    %cst_9 = arith.constant dense<0.000000e+00> : vector<16x16xf32>
    %11 = tpu.matmul %8, %9, %cst_9 {dimension_numbers = #tpu.dot_dimension_numbers<[1], [0], [0], [1], [0, 0, 1, 1], [], []>} : vector<16x32xf32>, vector<32x16xf32>, vector<16x16xf32> -> vector<16x16xf32>
    %12 = vector.broadcast %7 : vector<16x1xf32> to vector<16x16xf32>
    %13 = arith.mulf %12, %11 : vector<16x16xf32>
    %cst_10 = arith.constant dense<0.000000e+00> : vector<16x16xf32>
    %14 = tpu.matmul %0, %13, %cst_10 {dimension_numbers = #tpu.dot_dimension_numbers<[1], [0], [0], [1], [0, 0, 1, 1], [], []>} : vector<16x16xf32>, vector<16x16xf32>, vector<16x16xf32> -> vector<16x16xf32>
    %15 = vector.broadcast %7 : vector<16x1xf32> to vector<16x16xf32>
    %16 = arith.mulf %15, %14 : vector<16x16xf32>
    %17 = vector.broadcast %10 : vector<1x16xf32> to vector<16x16xf32>
    %18 = arith.addf %16, %17 : vector<16x16xf32>
    %c0_11 = arith.constant 0 : index
    %c0_12 = arith.constant 0 : index
    %19 = vector.load %arg7[%c0_11, %c0_12] : memref<16x8xf32, #tpu.memory_space<vmem>>, vector<16x8xf32>
    %c0_13 = arith.constant 0 : index
    %c0_14 = arith.constant 0 : index
    %20 = vector.load %arg8[%c0_13, %c0_14] : memref<1x8xf32, #tpu.memory_space<vmem>>, vector<1x8xf32>
    %cst_15 = arith.constant dense<0.000000e+00> : vector<16x8xf32>
    %21 = tpu.matmul %18, %19, %cst_15 {dimension_numbers = #tpu.dot_dimension_numbers<[1], [0], [0], [1], [0, 0, 1, 1], [], []>} : vector<16x16xf32>, vector<16x8xf32>, vector<16x8xf32> -> vector<16x8xf32>
    %22 = vector.broadcast %7 : vector<16x1xf32> to vector<16x8xf32>
    %23 = arith.mulf %22, %21 : vector<16x8xf32>
    %cst_16 = arith.constant dense<0.000000e+00> : vector<16x8xf32>
    %24 = tpu.matmul %0, %23, %cst_16 {dimension_numbers = #tpu.dot_dimension_numbers<[1], [0], [0], [1], [0, 0, 1, 1], [], []>} : vector<16x16xf32>, vector<16x8xf32>, vector<16x8xf32> -> vector<16x8xf32>
    %25 = vector.broadcast %7 : vector<16x1xf32> to vector<16x8xf32>
    %26 = arith.mulf %25, %24 : vector<16x8xf32>
    %27 = vector.broadcast %20 : vector<1x8xf32> to vector<16x8xf32>
    %28 = arith.addf %26, %27 : vector<16x8xf32>
    %c0_17 = arith.constant 0 : index
    %c0_18 = arith.constant 0 : index
    %29 = vector.load %arg2[%c0_17, %c0_18] : memref<2x16xf32, #tpu.memory_space<vmem>>, vector<2x16xf32>
    %cst_19 = arith.constant dense<0.000000e+00> : vector<2x8xf32>
    %30 = tpu.matmul %29, %28, %cst_19 {dimension_numbers = #tpu.dot_dimension_numbers<[1], [0], [0], [1], [0, 0, 1, 1], [], []>} : vector<2x16xf32>, vector<16x8xf32>, vector<2x8xf32> -> vector<2x8xf32>
    %c0_20 = arith.constant 0 : index
    %c0_21 = arith.constant 0 : index
    %31 = vector.load %arg1[%c0_20, %c0_21] : memref<2x8xf32, #tpu.memory_space<vmem>>, vector<2x8xf32>
    %c0_22 = arith.constant 0 : index
    %c0_23 = arith.constant 0 : index
    %32 = vector.load %arg9[%c0_22, %c0_23] : memref<1x8xf32, #tpu.memory_space<vmem>>, vector<1x8xf32>
    %33 = vector.broadcast %32 : vector<1x8xf32> to vector<2x8xf32>
    %34 = arith.mulf %31, %33 : vector<2x8xf32>
    %cst_24 = arith.constant dense<0.000000e+00> : vector<2xf32>
    %35 = vector.multi_reduction <add>, %34, %cst_24 [1] : vector<2x8xf32> to vector<2xf32>
    %36 = vector.shape_cast %35 : vector<2xf32> to vector<2x1xf32>
    %c0_25 = arith.constant 0 : index
    %c0_26 = arith.constant 0 : index
    %37 = vector.load %arg10[%c0_25, %c0_26] : memref<1x8xf32, #tpu.memory_space<vmem>>, vector<1x8xf32>
    %38 = vector.broadcast %37 : vector<1x8xf32> to vector<2x8xf32>
    %39 = arith.mulf %30, %38 : vector<2x8xf32>
    %cst_27 = arith.constant dense<0.000000e+00> : vector<2xf32>
    %40 = vector.multi_reduction <add>, %39, %cst_27 [1] : vector<2x8xf32> to vector<2xf32>
    %41 = vector.shape_cast %40 : vector<2xf32> to vector<2x1xf32>
    %42 = arith.addf %36, %41 : vector<2x1xf32>
    %c0_28 = arith.constant 0 : index
    %c0_29 = arith.constant 0 : index
    %43 = vector.load %arg11[%c0_28, %c0_29] : memref<1x1xf32, #tpu.memory_space<vmem>>, vector<1x1xf32>
    %44 = vector.broadcast %43 : vector<1x1xf32> to vector<2x1xf32>
    %45 = arith.addf %42, %44 : vector<2x1xf32>
    %cst_30 = arith.constant 0.000000e+00 : f32
    %46 = vector.broadcast %cst_30 : f32 to vector<2x1xf32>
    %47 = arith.subf %46, %45 : vector<2x1xf32>
    %48 = math.exp %47 : vector<2x1xf32>
    %cst_31 = arith.constant 1.000000e+00 : f32
    %49 = vector.broadcast %cst_31 : f32 to vector<2x1xf32>
    %50 = arith.addf %49, %48 : vector<2x1xf32>
    %cst_32 = arith.constant 1.000000e+00 : f32
    %51 = vector.broadcast %cst_32 : f32 to vector<2x1xf32>
    %52 = arith.divf %51, %50 : vector<2x1xf32>
    %c0_33 = arith.constant 0 : index
    %c0_34 = arith.constant 0 : index
    %53 = vector.load %arg12[%c0_33, %c0_34] : memref<2x1xf32, #tpu.memory_space<vmem>>, vector<2x1xf32>
    tpu.vector_store %arg12[%c0_33, %c0_34], %52 {strides = array<i32>} : memref<2x1xf32, #tpu.memory_space<vmem>>, vector<2x1xf32>,
    return
  }
  func.func @transform_0(%arg0: i32) -> (i32, i32) {
    %c0_i32 = arith.constant 0 : i32
    %c0_i32_0 = arith.constant 0 : i32
    %c0_i32_1 = arith.constant 0 : i32
    return %c0_i32, %c0_i32_0 : i32, i32
  }
  func.func @transform_1(%arg0: i32) -> (i32, i32) {
    %c0_i32 = arith.constant 0 : i32
    %c0_i32_0 = arith.constant 0 : i32
    %c0_i32_1 = arith.constant 0 : i32
    return %c0_i32, %c0_i32_0 : i32, i32
  }
  func.func @transform_2(%arg0: i32) -> (i32, i32) {
    %c0_i32 = arith.constant 0 : i32
    %c0_i32_0 = arith.constant 0 : i32
    %c0_i32_1 = arith.constant 0 : i32
    return %c0_i32, %c0_i32_0 : i32, i32
  }
  func.func @transform_3(%arg0: i32) -> (i32, i32) {
    %c0_i32 = arith.constant 0 : i32
    %c0_i32_0 = arith.constant 0 : i32
    %c0_i32_1 = arith.constant 0 : i32
    return %c0_i32, %c0_i32_0 : i32, i32
  }
  func.func @transform_4(%arg0: i32) -> (i32, i32) {
    %c0_i32 = arith.constant 0 : i32
    %c0_i32_0 = arith.constant 0 : i32
    %c0_i32_1 = arith.constant 0 : i32
    return %c0_i32, %c0_i32_0 : i32, i32
  }
  func.func @transform_5(%arg0: i32) -> (i32, i32) {
    %c0_i32 = arith.constant 0 : i32
    %c0_i32_0 = arith.constant 0 : i32
    %c0_i32_1 = arith.constant 0 : i32
    return %c0_i32, %c0_i32_0 : i32, i32
  }
  func.func @transform_6(%arg0: i32) -> (i32, i32) {
    %c0_i32 = arith.constant 0 : i32
    %c0_i32_0 = arith.constant 0 : i32
    %c0_i32_1 = arith.constant 0 : i32
    return %c0_i32, %c0_i32_0 : i32, i32
  }
  func.func @transform_7(%arg0: i32) -> (i32, i32) {
    %c0_i32 = arith.constant 0 : i32
    %c0_i32_0 = arith.constant 0 : i32
    %c0_i32_1 = arith.constant 0 : i32
    return %c0_i32, %c0_i32_0 : i32, i32
  }
  func.func @transform_8(%arg0: i32) -> (i32, i32) {
    %c0_i32 = arith.constant 0 : i32
    %c0_i32_0 = arith.constant 0 : i32
    %c0_i32_1 = arith.constant 0 : i32
    return %c0_i32, %c0_i32_0 : i32, i32
  }
  func.func @transform_9(%arg0: i32) -> (i32, i32) {
    %c0_i32 = arith.constant 0 : i32
    %c0_i32_0 = arith.constant 0 : i32
    %c0_i32_1 = arith.constant 0 : i32
    return %c0_i32, %c0_i32_0 : i32, i32
  }
  func.func @transform_10(%arg0: i32) -> (i32, i32) {
    %c0_i32 = arith.constant 0 : i32
    %c0_i32_0 = arith.constant 0 : i32
    %c0_i32_1 = arith.constant 0 : i32
    return %c0_i32, %c0_i32_0 : i32, i32
  }
  func.func @transform_11(%arg0: i32) -> (i32, i32) {
    %c0_i32 = arith.constant 0 : i32
    %c0_i32_0 = arith.constant 0 : i32
    %c0_i32_1 = arith.constant 0 : i32
    return %c0_i32, %c0_i32_0 : i32, i32
  }
}

</mosaic_0001>

<bundles_post_ra>
// kernel: tpu_custom_call.1
= control target key start
LH: loop header
LB: loop body
LE: loop exit
PB: predicated region body
PF: predicated region fallthrough
CT: control target
= control target key end

     0   :  { %vm62_vm0 = vcmask 261120   ;;  %vm42_vm1 = vcmask 130048   ;;  %v635_v38 = vmov 0.0|0.0   ;;  %vm636_vm4 = vmmov 0   ;;  %s763_s4 = inlined_call_operand.vmem [shape: f32[32,16], index: 4, kind: input, shape index: {}]   ;;  %s764_s2 = inlined_call_operand.vmem [shape: f32[16,32], index: 2, kind: input, shape index: {}]   ;;  %s765_s3 = inlined_call_operand.vmem [shape: f32[16,16], index: 3, kind: input, shape index: {}]   ;;  %s766_s6 = inlined_call_operand.vmem [shape: f32[16,8], index: 6, kind: input, shape index: {}]   ;;  %s767_s5 = inlined_call_operand.vmem [shape: f32[1,16], index: 5, kind: input, shape index: {}]   ;;  %s768_s7 = inlined_call_operand.vmem [shape: f32[1,8], index: 7, kind: input, shape index: {}]   ;;  %s769_s1 = inlined_call_operand.vmem [shape: f32[2,16], index: 1, kind: input, shape index: {}]   ;;  %s770_s0 = inlined_call_operand.vmem [shape: f32[2,8], index: 0, kind: input, shape index: {}]   ;;  %s771_s8 = inlined_call_operand.vmem [shape: f32[1,8], index: 8, kind: input, shape index: {}]   ;;  %s772_s10 = inlined_call_operand.<no memory space> [shape: f32[1,1], index: 10, kind: input, shape index: {}]   ;;  %s773_s9 = inlined_call_operand.vmem [shape: f32[1,8], index: 9, kind: input, shape index: {}]   ;;  %s774_s11 = inlined_call_operand.vmem [shape: f32[2,1], index: 11, kind: output, shape index: {}]  }
   0x1   :  { %v57_v0 = vld [vmem:[%s763_s4] sm:$0xff]  ;;  %v58_v1 = vld [vmem:[%s763_s4 + $0x8] sm:$0xff]  ;;  %v59_v2 = vld [vmem:[%s763_s4 + $0x10] sm:$0xff]  ;;  %v637_v39 = vmov 0.0   ;;  %vm491_vm5 = vcmask 58368   ;;  %v16_v53 = vstv %s772_s10  ;;  %vm521_vm6 = vcmask 1024  }
   0x2   :  { %v601_v3 = vpack.c.bf16 %v58_v1, %v57_v0  ;;  %v60_v4 = vld [vmem:[%s763_s4 + $0x18] sm:$0xff]  ;;  %v55_v5 = vld [vmem:[%s764_s2] sm:$0xff]  ;;  %v41_v8 = vld [vmem:[%s765_s3 + $0x8] sm:$0xff]  ;;  %17 = vst [vmem:[#allocation2] sm:$0x1] %v16_v53 }
   0x3   :  { %v605_v6 = vpack.c.bf16 %v60_v4, %v59_v2  ;;  %570 = vmatprep.mubr.msk.f32.mxu0 %vm62_vm0, %v55_v5  ;;  %v40_v7 = vld [vmem:[%s765_s3] sm:$0xff]  ;;  %v46_v10 = vsel %vm42_vm1, %v41_v8, 0.0  ;;  %v56_v11 = vld [vmem:[%s764_s2 + $0x8] sm:$0xff] }
   0x4   :  { %602 = vmatprep.subr.bf16.mxu0 %v601_v3  ;;  %v43_v9 = vsel %vm42_vm1, %v40_v7, 0.0  ;;  %577 = vmatprep.mubr.msk.f32.mxu1 %vm42_vm1, %v40_v7  ;;  %v237_v23 = vld [vmem:[%s766_s6] sm:$0xff]  ;;  %v238_v24 = vld [vmem:[%s766_s6 + $0x8] sm:$0xff] }
   0x5   :  { %604 = vmatpush3.bf16.msra.mxu0 %v601_v3  ;;  %44 = vadd.xlane.f32.xlu0 %v43_v9  ;;  %v613_v25 = vpack.c.bf16 %v238_v24, %v237_v23  ;;  %v531_v27 = vld [vmem:[%s767_s5] ss:$0 sm:$0xff] }
   0x6   :  { %606 = vmatprep.subr.bf16.mxu0 %v605_v6  ;;  %v536_v40 = vld [vmem:[%s768_s7] ss:$0 sm:$0xff] }
   0x7   :  { %v408_v48 = vld [vmem:[%s769_s1] sm:$0x3] }
   0x8   :  { %v482_v49 = vld [vmem:[%s770_s0] sm:$0x3] }
   0x9   :  { %608 = vmatpush3.bf16.msra.mxu0 %v605_v6  ;;  %47 = vadd.xlane.f32.xlu0 %v46_v10  ;;  %v538_v50 = vld [vmem:[%s771_s8] ss:$0 sm:$0xff] }
   0xa   :  { %v490_v51 = vmul.f32 %v538_v50, %v482_v49  ;;  %v539_v54 = vld [vmem:[%s773_s9] ss:$0 sm:$0xff] }
   0xb   :  { %v540_v60 = vld [vmem:[#allocation2] ss:$0 sm:$0xff] }
   0xc   :  { %571 = vmatmul.mubr.msk.f32.vlgmr.msra.gmra.mrb[0].mxu0 %vm62_vm0, %v56_v11  ;;  %v492_v52 = vsel %vm491_vm5, %v490_v51, 0.0 }
   0xd   :  { %591 = vmatprep.mubr.msk.f32.mxu0 %vm42_vm1, %v40_v7  ;;  %493 = vadd.xlane.f32.xlu1 %v492_v52 }
  0x92   :  { %v45_v12 = vpop.xlane.xlu0 %44 }
  0x93   :  { %vm49_vm3 = vcmp.gt.f32.partialorder %v45_v12, 0.0 }
  0x96   :  { %v48_v13 = vpop.xlane.xlu0 %47 }
  0x97   :  { %627 = vrsqrt.f32 %v48_v13  ;;  %vm50_vm2 = vcmp.gt.f32.partialorder %v48_v13, 0.0 }
  0x98   :  { %629 = vrsqrt.f32 %v45_v12 }
  0x9a   :  { %v494_v59 = vpop.xlane.xlu1 %493 }
  0xa1   :  { %v628_v14 = vpop.eup %627 }
  0xa2   :  { %v630_v15 = vpop.eup %629  ;;  %v54_v16 = vsel %vm50_vm2, %v628_v14, 0.0 }
  0xa3   :  { %v53_v18 = vsel %vm49_vm3, %v630_v15, 0.0 }
  0xdf   :  { %v572_v17 = vpop.f32.mrb[0].mxu0 }
  0xe0   :  { %v145_v19 = vmul.f32 %v572_v17, %v54_v16  ;;  %v135_v20 = vpop.f32.mrb[1].mxu0 }
  0xe1   :  { %v144_v21 = vmul.f32 %v135_v20, %v53_v18 }
  0xe3   :  { %v609_v22 = vpack.c.bf16 %v145_v19, %v144_v21 }
  0xe5   :  { %610 = vmatprep.subr.bf16.mxu1 %v609_v22 }
  0xe6   :  { %612 = vmatpush3.bf16.msra.mxu1 %v609_v22 }
  0xe7   :  { %614 = vmatprep.subr.bf16.mxu1 %v613_v25 }
  0xe9   :  { %578 = vmatmul.mubr.msk.f32.vlgmr.msra.gmra.mrb[0].mxu1 %vm42_vm1, %v41_v8 }
  0xea   :  { %616 = vmatpush3.bf16.msra.mxu1 %v613_v25 }
  0xeb   :  { %621 = vmatprep.subr.bf16.mxu1 %v635_v38 }
 0x1bc   :  { %v579_v26 = vpop.f32.mrb[0].mxu1 }
 0x1bd   :  { %v228_v28 = vmul.f32 %v579_v26, %v54_v16  ;;  %v218_v29 = vpop.f32.mrb[1].mxu1 }
 0x1be   :  { %v227_v30 = vmul.f32 %v218_v29, %v53_v18 }
 0x1bf   :  { %v236_v32 = vadd.f32 %v531_v27, %v228_v28 }
 0x1c0   :  { %v235_v31 = vadd.f32 %v531_v27, %v227_v30 }
 0x1c2   :  { %584 = vmatprep.mubr.msk.f32.mxu1 %vm42_vm1, %v235_v31 }
 0x1c3   :  { %585 = vmatmul.mubr.msk.f32.vlgmr.msra.gmra.mrb[2].mxu1 %vm42_vm1, %v236_v32 }
 0x1c4   :  { %598 = vmatprep.mubr.msk.f32.mxu1 %vm636_vm4, %v637_v39 }
 0x296   :  { %v586_v33 = vpop.f32.mrb[2].mxu1 }
 0x297   :  { %v322_v34 = vmul.f32 %v586_v33, %v54_v16  ;;  %v312_v35 = vpop.f32.mrb[3].mxu1 }
 0x298   :  { %v321_v36 = vmul.f32 %v312_v35, %v53_v18 }
 0x29a   :  { %v617_v37 = vpack.c.bf16 %v322_v34, %v321_v36 }
 0x29c   :  { %618 = vmatprep.subr.bf16.mxu0 %v617_v37 }
 0x29d   :  { %620 = vmatpush3.bf16.msra.mxu0 %v617_v37 }
 0x2a0   :  { %592 = vmatmul.mubr.msk.f32.vlgmr.msra.gmra.mrb[2].mxu0 %vm42_vm1, %v41_v8 }
 0x373   :  { %v593_v41 = vpop.f32.mrb[2].mxu0 }
 0x374   :  { %v399_v42 = vmul.f32 %v593_v41, %v54_v16  ;;  %v389_v43 = vpop.f32.mrb[3].mxu0 }
 0x375   :  { %v398_v44 = vmul.f32 %v389_v43, %v53_v18 }
 0x376   :  { %v407_v45 = vadd.f32 %v536_v40, %v399_v42 }
 0x377   :  { %v406_v46 = vadd.f32 %v536_v40, %v398_v44 }
 0x379   :  { %v622_v47 = vpack.c.bf16 %v407_v45, %v406_v46 }
 0x37b   :  { %623 = vmatpush3.bf16.msra.mxu1 %v622_v47 }
 0x37e   :  { %599 = vmatmul.mubr.msk.f32.vlgmr.msra.gmra.mrb[4].mxu1 %vm42_vm1, %v408_v48 }
 0x451   :  { %v478_v55 = vpop.f32.mrb[4].mxu1 }
 0x452   :  { %v502_v56 = vmul.f32 %v539_v54, %v478_v55  ;;  %v600_v57 = vpop.f32.mrb[5].mxu1 }
 0x454   :  { %v503_v58 = vsel %vm491_vm5, %v502_v56, 0.0 }
 0x455   :  { %504 = vadd.xlane.f32.xlu1 %v503_v58 }
 0x4e2   :  { %v505_v61 = vpop.xlane.xlu1 %504 }
 0x4e3   :  { %v506_v62 = vadd.f32 %v505_v61, %v494_v59 }
 0x4e5   :  { %v514_v63 = vadd.f32 %v540_v60, %v506_v62 }
 0x4e7   :  { %v515_v0 = vsub.f32 0.0, %v514_v63 }
 0x4e9   :  { %v516_v1 = vmul.f32 1.442695, %v515_v0 }
 0x4eb   :  { %631 = vpow2.f32 %v516_v1 }
 0x4f5   :  { %v632_v2 = vpop.eup %631 }
 0x4f6   :  { %v518_v3 = vadd.f32 1.0, %v632_v2 }
 0x4f8   :  { %633 = vrcp.f32 %v518_v3 }
 0x502   :  { %v634_v4 = vpop.eup %633 }
 0x503   :  { %522 = vst.msk [vmem:[%s774_s11] sm:$0x3] %vm521_vm6, %v634_v4 }

</bundles_post_ra>
